<compile_context>
chip_gen: v7x
topology: tpu7x:2x2x1
jax: 0.10.0
libtpu: 0.0.40
codegen_flags: <defaults>
</compile_context>

<pallas_src>
import functools
from typing import NamedTuple

import jax
import jax.numpy as jnp
from jax.experimental import pallas as pl
from jax.experimental.pallas import tpu as pltpu

LOG_STD_MAX = 2.0
LOG_STD_MIN = -20.0

_LANE = 128      # vreg lane width (last dim)
_SUBLANE = 8     # vreg sublane count (second-to-last dim)


def _round_up(x: int, m: int) -> int:
    return ((x + m - 1) // m) * m


def _pad2d(x, rows, cols):
    return jnp.pad(x, ((0, rows - x.shape[0]), (0, cols - x.shape[1])))


class PreparedPolicyParams(NamedTuple):
    """Weights padded/cast once (call prepare_params once, reuse every step)."""
    w1: jax.Array    # (S,  Hp) mm_dtype
    b1: jax.Array    # (1,  Hp) f32
    w2: jax.Array    # (Hp, Hp) mm_dtype
    b2: jax.Array    # (1,  Hp) f32
    w3: jax.Array    # (Hp, A)  mm_dtype
    b3: jax.Array    # (1,  A)  f32
    std: jax.Array   # (A,)     f32


def policy_mean_kernel(obs_ref, w1_ref, b1_ref, w2_ref, b2_ref, w3_ref, b3_ref,
                       mean_ref, *, mm_dtype):
    """One batch tile per grid step.  Weights/biases use constant index_maps,
    so Pallas keeps them VMEM-resident across grid iterations.  Matmuls run in
    mm_dtype (bf16 MXU fast path by default); accumulation, biases, relu and
    tanh stay in f32."""
    x = obs_ref[...].astype(mm_dtype)                                   # (TB, S)
    # Linear 1 + ReLU
    h = jnp.dot(x, w1_ref[...], preferred_element_type=jnp.float32) + b1_ref[...]
    h = jnp.maximum(h, 0.0)                                             # (TB, Hp) f32
    # Linear 2 + ReLU
    h = jnp.dot(h.astype(mm_dtype), w2_ref[...],
                preferred_element_type=jnp.float32) + b2_ref[...]
    h = jnp.maximum(h, 0.0)                                             # (TB, Hp) f32
    # Output linear + Tanh (act dim kept at its real width; store is lane-narrow
    # but 16x less HBM writeback than a 128-padded block).
    m = jnp.dot(h.astype(mm_dtype), w3_ref[...],
                preferred_element_type=jnp.float32) + b3_ref[...]
    mean_ref[...] = jnp.tanh(m)                                         # (TB, A) f32


def prepare_params(params, *, use_bf16_matmul=True):
    """One-time padding / casting of the policy parameters (hoisted out of the
    per-forward path).  Only the hidden dim is padded to a lane multiple; the
    obs dim S and act dim A keep their real widths."""
    w1, b1, w2, b2, w3, b3, log_std = params
    S, H = w1.shape
    A = w3.shape[1]
    Hp = _round_up(H, _LANE)   # IQL hidden=256 already lands on the v6e/v7x 256-wide MXU
    mm_dtype = jnp.bfloat16 if use_bf16_matmul else jnp.float32

    w1_p = _pad2d(w1.astype(mm_dtype), S, Hp)
    w2_p = _pad2d(w2.astype(mm_dtype), Hp, Hp)
    w3_p = _pad2d(w3.astype(mm_dtype), Hp, A)
    b1_p = _pad2d(jnp.reshape(b1, (1, -1)).astype(jnp.float32), 1, Hp)
    b2_p = _pad2d(jnp.reshape(b2, (1, -1)).astype(jnp.float32), 1, Hp)
    b3_p = jnp.reshape(b3, (1, -1)).astype(jnp.float32)

    # std is batch-independent: compute it once here, not per forward.
    std = jnp.exp(jnp.clip(jnp.reshape(log_std, (-1,)), LOG_STD_MIN, LOG_STD_MAX))
    return PreparedPolicyParams(w1_p, b1_p, w2_p, b2_p, w3_p, b3_p, std)


def _choose_batch_tiling(B, block_b):
    """Pad the batch only to a sublane multiple and pick a tile that divides the
    padded batch exactly (avoids ~2x row amplification from round_up(B, tb))."""
    Bp = _round_up(max(B, _SUBLANE), _SUBLANE)
    block_b = max(_SUBLANE, _round_up(block_b, _SUBLANE))
    if Bp <= block_b:
        return Bp, Bp, 1                       # single step: whole (padded) batch
    n = -(-Bp // block_b)                      # >=2 grid steps -> both v7x TCs engage
    tb = _round_up(-(-Bp // n), _SUBLANE)
    return tb, n * tb, n


def gaussian_policy_forward(obs, prepared: PreparedPolicyParams, *,
                            block_b=1024, single_buffer_weights=False):
    """Returns (mean, std) of the policy Normal distribution.

    mean: (B, act_dim) float32
    std : (act_dim,)  float32  (batch independent; broadcasts like torch Normal)
    """
    w1, b1, w2, b2, w3, b3, std = prepared
    B, S = obs.shape
    assert S == w1.shape[0], "obs feature dim must match W1"
    Hp = w1.shape[1]
    A = w3.shape[1]
    mm_dtype = w1.dtype

    tb, Bp, n_tiles = _choose_batch_tiling(B, block_b)
    obs_p = obs if Bp == B else jnp.pad(obs, ((0, Bp - B), (0, 0)))

    # Weights never change across grid steps; optionally single-buffer them to
    # halve their VMEM footprint (only matters for very large hidden on v7x).
    weight_kwargs = {}
    if single_buffer_weights:
        weight_kwargs["pipeline_mode"] = pl.Buffered(1)

    def batch_spec(shp):
        return pl.BlockSpec(shp, lambda i: (i, 0))

    def const_spec(shp):
        return pl.BlockSpec(shp, lambda i: (0, 0), **weight_kwargs)

    mean_p = pl.pallas_call(
        functools.partial(policy_mean_kernel, mm_dtype=mm_dtype),
        grid=(n_tiles,),
        out_shape=jax.ShapeDtypeStruct((Bp, A), jnp.float32),
        in_specs=[
            batch_spec((tb, S)),                        # obs tile (real S, no K pad)
            const_spec((S, Hp)), const_spec((1, Hp)),   # W1, b1 (VMEM resident)
            const_spec((Hp, Hp)), const_spec((1, Hp)),  # W2, b2 (VMEM resident)
            const_spec((Hp, A)), const_spec((1, A)),    # W3, b3 (VMEM resident)
        ],
        out_specs=batch_spec((tb, A)),                  # full-extent A: no lane pad
        compiler_params=pltpu.CompilerParams(
            dimension_semantics=("parallel",),          # batch axis -> dual-TC on v7x
            vmem_limit_bytes=32 * 1024 * 1024),
    )(obs_p, w1, b1, w2, b2, w3, b3)

    mean = mean_p if Bp == B else mean_p[:B]
    return mean, std


def init_params(key, state_dim, act_dim, hidden_dim):
    """Deterministic init mimicking PyTorch nn.Linear default (U[-1/sqrt(fan_in), +]).
    Weights stored as (in, out) so the kernel computes x @ W directly."""
    def linear(k, fan_in, fan_out):
        kw, kb = jax.random.split(k)
        bound = 1.0 / jnp.sqrt(fan_in)
        w = jax.random.uniform(kw, (fan_in, fan_out), jnp.float32, -bound, bound)
        b = jax.random.uniform(kb, (1, fan_out), jnp.float32, -bound, bound)
        return w, b

    k1, k2, k3 = jax.random.split(key, 3)
    w1, b1 = linear(k1, state_dim, hidden_dim)
    w2, b2 = linear(k2, hidden_dim, hidden_dim)
    w3, b3 = linear(k3, hidden_dim, act_dim)
    log_std = jnp.zeros((1, act_dim), jnp.float32)   # nn.Parameter(torch.zeros(act_dim))
    return (w1, b1, w2, b2, w3, b3, log_std)


def reference_forward(obs, params):
    w1, b1, w2, b2, w3, b3, log_std = params
    h = jnp.maximum(obs @ w1 + b1, 0.0)
    h = jnp.maximum(h @ w2 + b2, 0.0)
    mean = jnp.tanh(h @ w3 + b3)
    std = jnp.exp(jnp.clip(jnp.reshape(log_std, (-1,)), LOG_STD_MIN, LOG_STD_MAX))
    return mean, std


if __name__ == "__main__":
    state_dim, act_dim, hidden_dim = 16, 8, 32
    batch = 8

    key = jax.random.PRNGKey(0)
    k_params, k_obs, k_obs2 = jax.random.split(key, 3)
    params = init_params(k_params, state_dim, act_dim, hidden_dim)
    obs = jax.random.normal(k_obs, (batch, state_dim), jnp.float32)

    mean_ref, std_ref = reference_forward(obs, params)

    # f32-matmul build: tight tolerance against the f32 reference.
    prep32 = prepare_params(params, use_bf16_matmul=False)
    mean32, std32 = gaussian_policy_forward(obs, prep32)
    jax.block_until_ready((mean32, std32))
    assert mean32.shape == (batch, act_dim) and std32.shape == (act_dim,)
    assert jnp.allclose(mean32, mean_ref, atol=1e-5, rtol=1e-5)
    assert jnp.allclose(std32, std_ref, atol=1e-6, rtol=1e-6)

    # bf16 matmul build (default, v5e/v6e/v7x MXU fast path): loose tolerance.
    prep16 = prepare_params(params, use_bf16_matmul=True)
    mean16, std16 = gaussian_policy_forward(obs, prep16)
    jax.block_until_ready((mean16, std16))
    assert mean16.shape == (batch, act_dim) and std16.shape == (act_dim,)
    assert jnp.allclose(mean16, mean_ref, atol=2e-2, rtol=2e-2)
    assert jnp.allclose(std16, std_ref, atol=1e-6, rtol=1e-6)

    # Multi-tile grid path (exercises batch tiling + tail padding): B=20, tb=8.
    obs_big = jax.random.normal(k_obs2, (20, state_dim), jnp.float32)
    mean_big_ref, _ = reference_forward(obs_big, params)
    mean_big, _ = gaussian_policy_forward(obs_big, prep32, block_b=8)
    jax.block_until_ready(mean_big)
    assert mean_big.shape == (20, act_dim)
    assert jnp.allclose(mean_big, mean_big_ref, atol=1e-5, rtol=1e-5)

    print("KERNEL_OK")
</pallas_src>

<mosaic_0001>
module attributes {stable_mosaic.version = 11 : i64} {
  func.func @policy_mean_kernel(%arg0: i32, %arg1: memref<8x16xf32, #tpu.memory_space<vmem>>, %arg2: memref<16x128xf32, #tpu.memory_space<vmem>>, %arg3: memref<1x128xf32, #tpu.memory_space<vmem>>, %arg4: memref<128x128xf32, #tpu.memory_space<vmem>>, %arg5: memref<1x128xf32, #tpu.memory_space<vmem>>, %arg6: memref<128x8xf32, #tpu.memory_space<vmem>>, %arg7: memref<1x8xf32, #tpu.memory_space<vmem>>, %arg8: memref<8x8xf32, #tpu.memory_space<vmem>>) attributes {dimension_semantics = [#tpu.dimension_semantics<parallel>], iteration_bounds = array<i64: 1>, scalar_prefetch = 0 : i64, scratch_operands = 0 : i64, tpu.core_type = #tpu.core_type<tc>, window_params = [{transform_indices = @transform_0, window_bounds = array<i64: 8, 16>}, {pipeline_mode = #tpu.pipeline_mode<synchronous>, transform_indices = @transform_1, window_bounds = array<i64: 16, 128>}, {pipeline_mode = #tpu.pipeline_mode<synchronous>, transform_indices = @transform_2, window_bounds = array<i64: 1, 128>}, {pipeline_mode = #tpu.pipeline_mode<synchronous>, transform_indices = @transform_3, window_bounds = array<i64: 128, 128>}, {pipeline_mode = #tpu.pipeline_mode<synchronous>, transform_indices = @transform_4, window_bounds = array<i64: 1, 128>}, {pipeline_mode = #tpu.pipeline_mode<synchronous>, transform_indices = @transform_5, window_bounds = array<i64: 128, 8>}, {pipeline_mode = #tpu.pipeline_mode<synchronous>, transform_indices = @transform_6, window_bounds = array<i64: 1, 8>}, {transform_indices = @transform_7, window_bounds = array<i64: 8, 8>}]} {
    %c0 = arith.constant 0 : index
    %c0_0 = arith.constant 0 : index
    %0 = vector.load %arg1[%c0, %c0_0] : memref<8x16xf32, #tpu.memory_space<vmem>>, vector<8x16xf32>
    %c0_1 = arith.constant 0 : index
    %c0_2 = arith.constant 0 : index
    %1 = vector.load %arg2[%c0_1, %c0_2] : memref<16x128xf32, #tpu.memory_space<vmem>>, vector<16x128xf32>
    %cst = arith.constant dense<0.000000e+00> : vector<8x128xf32>
    %2 = tpu.matmul %0, %1, %cst {dimension_numbers = #tpu.dot_dimension_numbers<[1], [0], [0], [1], [0, 0, 1, 1], [], []>} : vector<8x16xf32>, vector<16x128xf32>, vector<8x128xf32> -> vector<8x128xf32>
    %c0_3 = arith.constant 0 : index
    %c0_4 = arith.constant 0 : index
    %3 = vector.load %arg3[%c0_3, %c0_4] : memref<1x128xf32, #tpu.memory_space<vmem>>, vector<1x128xf32>
    %4 = vector.broadcast %3 : vector<1x128xf32> to vector<8x128xf32>
    %5 = arith.addf %2, %4 : vector<8x128xf32>
    %cst_5 = arith.constant 0.000000e+00 : f32
    %6 = vector.broadcast %cst_5 : f32 to vector<8x128xf32>
    %7 = arith.maximumf %5, %6 : vector<8x128xf32>
    %c0_6 = arith.constant 0 : index
    %c0_7 = arith.constant 0 : index
    %8 = vector.load %arg4[%c0_6, %c0_7] : memref<128x128xf32, #tpu.memory_space<vmem>>, vector<128x128xf32>
    %cst_8 = arith.constant dense<0.000000e+00> : vector<8x128xf32>
    %9 = tpu.matmul %7, %8, %cst_8 {dimension_numbers = #tpu.dot_dimension_numbers<[1], [0], [0], [1], [0, 0, 1, 1], [], []>} : vector<8x128xf32>, vector<128x128xf32>, vector<8x128xf32> -> vector<8x128xf32>
    %c0_9 = arith.constant 0 : index
    %c0_10 = arith.constant 0 : index
    %10 = vector.load %arg5[%c0_9, %c0_10] : memref<1x128xf32, #tpu.memory_space<vmem>>, vector<1x128xf32>
    %11 = vector.broadcast %10 : vector<1x128xf32> to vector<8x128xf32>
    %12 = arith.addf %9, %11 : vector<8x128xf32>
    %cst_11 = arith.constant 0.000000e+00 : f32
    %13 = vector.broadcast %cst_11 : f32 to vector<8x128xf32>
    %14 = arith.maximumf %12, %13 : vector<8x128xf32>
    %c0_12 = arith.constant 0 : index
    %c0_13 = arith.constant 0 : index
    %15 = vector.load %arg6[%c0_12, %c0_13] : memref<128x8xf32, #tpu.memory_space<vmem>>, vector<128x8xf32>
    %cst_14 = arith.constant dense<0.000000e+00> : vector<8x8xf32>
    %16 = tpu.matmul %14, %15, %cst_14 {dimension_numbers = #tpu.dot_dimension_numbers<[1], [0], [0], [1], [0, 0, 1, 1], [], []>} : vector<8x128xf32>, vector<128x8xf32>, vector<8x8xf32> -> vector<8x8xf32>
    %c0_15 = arith.constant 0 : index
    %c0_16 = arith.constant 0 : index
    %17 = vector.load %arg7[%c0_15, %c0_16] : memref<1x8xf32, #tpu.memory_space<vmem>>, vector<1x8xf32>
    %18 = vector.broadcast %17 : vector<1x8xf32> to vector<8x8xf32>
    %19 = arith.addf %16, %18 : vector<8x8xf32>
    %20 = math.tanh %19 : vector<8x8xf32>
    %c0_17 = arith.constant 0 : index
    %c0_18 = arith.constant 0 : index
    %21 = vector.load %arg8[%c0_17, %c0_18] : memref<8x8xf32, #tpu.memory_space<vmem>>, vector<8x8xf32>
    tpu.vector_store %arg8[%c0_17, %c0_18], %20 {strides = array<i32>} : memref<8x8xf32, #tpu.memory_space<vmem>>, vector<8x8xf32>,
    return
  }
  func.func @transform_0(%arg0: i32) -> (i32, i32) {
    %c0_i32 = arith.constant 0 : i32
    %c0_i32_0 = arith.constant 0 : i32
    return %arg0, %c0_i32 : i32, i32
  }
  func.func @transform_1(%arg0: i32) -> (i32, i32) {
    %c0_i32 = arith.constant 0 : i32
    %c0_i32_0 = arith.constant 0 : i32
    %c0_i32_1 = arith.constant 0 : i32
    return %c0_i32, %c0_i32_0 : i32, i32
  }
  func.func @transform_2(%arg0: i32) -> (i32, i32) {
    %c0_i32 = arith.constant 0 : i32
    %c0_i32_0 = arith.constant 0 : i32
    %c0_i32_1 = arith.constant 0 : i32
    return %c0_i32, %c0_i32_0 : i32, i32
  }
  func.func @transform_3(%arg0: i32) -> (i32, i32) {
    %c0_i32 = arith.constant 0 : i32
    %c0_i32_0 = arith.constant 0 : i32
    %c0_i32_1 = arith.constant 0 : i32
    return %c0_i32, %c0_i32_0 : i32, i32
  }
  func.func @transform_4(%arg0: i32) -> (i32, i32) {
    %c0_i32 = arith.constant 0 : i32
    %c0_i32_0 = arith.constant 0 : i32
    %c0_i32_1 = arith.constant 0 : i32
    return %c0_i32, %c0_i32_0 : i32, i32
  }
  func.func @transform_5(%arg0: i32) -> (i32, i32) {
    %c0_i32 = arith.constant 0 : i32
    %c0_i32_0 = arith.constant 0 : i32
    %c0_i32_1 = arith.constant 0 : i32
    return %c0_i32, %c0_i32_0 : i32, i32
  }
  func.func @transform_6(%arg0: i32) -> (i32, i32) {
    %c0_i32 = arith.constant 0 : i32
    %c0_i32_0 = arith.constant 0 : i32
    %c0_i32_1 = arith.constant 0 : i32
    return %c0_i32, %c0_i32_0 : i32, i32
  }
  func.func @transform_7(%arg0: i32) -> (i32, i32) {
    %c0_i32 = arith.constant 0 : i32
    %c0_i32_0 = arith.constant 0 : i32
    return %arg0, %c0_i32 : i32, i32
  }
}

</mosaic_0001>

<bundles_post_ra>
// kernel: tpu_custom_call.1
= control target key start
LH: loop header
LB: loop body
LE: loop exit
PB: predicated region body
PF: predicated region fallthrough
CT: control target
= control target key end

     0   :  { %12 = vsyncpa [#allocation3], 0  ;;  %s753_s0 = inlined_call_operand.hbm [shape: f32[8,16], index: 0, kind: input, shape index: {}]   ;;  %s754_s1 = inlined_call_operand.vmem [shape: f32[16,128], index: 1, kind: input, shape index: {}]   ;;  %s755_s2 = inlined_call_operand.vmem [shape: f32[1,128], index: 2, kind: input, shape index: {}]   ;;  %s756_s3 = inlined_call_operand.vmem [shape: f32[128,128], index: 3, kind: input, shape index: {}]   ;;  %s757_s4 = inlined_call_operand.vmem [shape: f32[1,128], index: 4, kind: input, shape index: {}]   ;;  %s758_s5 = inlined_call_operand.vmem [shape: f32[128,8], index: 5, kind: input, shape index: {}]   ;;  %s759_s6 = inlined_call_operand.vmem [shape: f32[1,8], index: 6, kind: input, shape index: {}]   ;;  %s760_s7 = inlined_call_operand.hbm [shape: f32[8,8], index: 7, kind: output, shape index: {}]  }
   0x1   :  { %13 = vsyncpa [#allocation4], 0  ;;  %s553_s24 = smov [#allocation2]   ;;  %s505_s28 = scalar_lea.hbm %s753_s0, 128 }
   0x2   :  { %s20_s25 = sshll.u32 %s553_s24, 4  ;;  %p506_p0 = scmp.ne.s32.totalorder %s753_s0, %s505_s28  ;;  %s21_s25 = int_to_ptr.vmem [resolvable:$true] %s20_s25 }
   0x3   :  { %p509_p1 = scmp.lt.u32.totalorder %s505_s28, %s753_s0 }
   0x5   :  { %p511_p2 = pnand %p509_p1, %p506_p0 }
   0x7   :  { %514 = shalt.err (!%p511_p2)
}
   0x8   :  { %s515_s10 = scalar_lea.vmem %s21_s25, 128  ;;  %p520_p4 = scmp.lt.s32.totalorder %s21_s25, %s21_s25 }
   0x9   :  { %p516_p3 = scmp.ne.s32.totalorder %s21_s25, %s515_s10  ;;  %p521_p5 = scmp.lt.s32.totalorder %s515_s10, %s515_s10 }
   0xb   :  { %p522_p6 = por %p521_p5, %p520_p4 }
   0xd   :  { %p523_p7 = pnand %p522_p6, %p516_p3 }
   0xf   :  { %526 = shalt.err (!%p523_p7)
}
  0x10   :  { %23 = dma.hbm_to_vmem [thread:$0]  %s753_s0, 128, %s21_s25, [#allocation3]  }
  0x11   :  { %549 = dma.done.wait [#allocation3], 128  }
  0x12   :  { %550 = vsyncadd [#allocation3], 4294967168  ;;  %v554_v0 = vmov 0.0|0.0   ;;  %vm555_vm0 = vmmov 0   ;;  %v556_v1 = vmov 0.0   ;;  %v40_v2 = vld [vmem:[%s754_s1] sm:$0xff] }
  0x13   :  { %447 = vmatprep.subr.bf16.mxu0 %v554_v0  ;;  %374 = vmatprep.mubr.msk.f32.mxu0 %vm555_vm0, %v556_v1  ;;  %v41_v3 = vld [vmem:[%s754_s1 + $0x8] sm:$0xff]  ;;  %v124_v5 = vld [vmem:[%s756_s3] sm:$0xff]  ;;  %v126_v7 = vld [vmem:[%s756_s3 + $0x10] sm:$0xff]  ;;  %vm49_vm1 = vcmask 130048   ;;  %vm312_vm2 = vcmask 64512  }
  0x14   :  { %450 = vmatprep.subr.bf16.mxu1 %v554_v0  ;;  %409 = vmatprep.mubr.msk.f32.mxu1 %vm555_vm0, %v556_v1  ;;  %v448_v4 = vpack.c.bf16 %v41_v3, %v40_v2  ;;  %v125_v6 = vld [vmem:[%s756_s3 + $0x8] sm:$0xff]  ;;  %v127_v9 = vld [vmem:[%s756_s3 + $0x18] sm:$0xff]  ;;  %v39_v10 = vld [vmem:[#allocation2] sm:$0xff] }
  0x15   :  { %v451_v8 = vpack.c.bf16 %v125_v6, %v124_v5  ;;  %v454_v11 = vpack.c.bf16 %v127_v9, %v126_v7  ;;  %v128_v12 = vld [vmem:[%s756_s3 + $0x20] sm:$0xff]  ;;  %v129_v13 = vld [vmem:[%s756_s3 + $0x28] sm:$0xff]  ;;  %v130_v15 = vld [vmem:[%s756_s3 + $0x30] sm:$0xff] }
  0x16   :  { %449 = vmatpush3.bf16.msra.mxu0 %v448_v4  ;;  %v457_v14 = vpack.c.bf16 %v129_v13, %v128_v12  ;;  %v131_v16 = vld [vmem:[%s756_s3 + $0x38] sm:$0xff]  ;;  %v132_v18 = vld [vmem:[%s756_s3 + $0x40] sm:$0xff]  ;;  %v133_v19 = vld [vmem:[%s756_s3 + $0x48] sm:$0xff] }
  0x17   :  { %452 = vmatpush3.bf16.msra.mxu1 %v451_v8  ;;  %474 = vmatprep.subr.bf16.mxu0 %v554_v0  ;;  %v460_v17 = vpack.c.bf16 %v131_v16, %v130_v15  ;;  %v463_v20 = vpack.c.bf16 %v133_v19, %v132_v18  ;;  %v134_v21 = vld [vmem:[%s756_s3 + $0x50] sm:$0xff]  ;;  %v135_v22 = vld [vmem:[%s756_s3 + $0x58] sm:$0xff]  ;;  %v136_v24 = vld [vmem:[%s756_s3 + $0x60] sm:$0xff] }
  0x18   :  { %453 = vmatprep.subr.bf16.mxu1 %v554_v0  ;;  %v466_v23 = vpack.c.bf16 %v135_v22, %v134_v21  ;;  %v137_v25 = vld [vmem:[%s756_s3 + $0x68] sm:$0xff]  ;;  %v138_v27 = vld [vmem:[%s756_s3 + $0x70] sm:$0xff]  ;;  %v139_v28 = vld [vmem:[%s756_s3 + $0x78] sm:$0xff] }
  0x19   :  { %375 = vmatmul.mubr.msk.f32.vlgmr.msra.gmra.mrb[0].mxu0 %vm49_vm1, %v39_v10  ;;  %v469_v26 = vpack.c.bf16 %v137_v25, %v136_v24  ;;  %v472_v29 = vpack.c.bf16 %v139_v28, %v138_v27  ;;  %v218_v30 = vld [vmem:[%s758_s5] sm:$0xff]  ;;  %v219_v31 = vld [vmem:[%s758_s5 + $0x8] sm:$0xff]  ;;  %v220_v32 = vld [vmem:[%s758_s5 + $0x10] sm:$0xff] }
  0x1a   :  { %444 = vmatprep.mubr.msk.f32.mxu0 %vm555_vm0, %v556_v1  ;;  %v475_v33 = vpack.c.bf16 %v219_v31, %v218_v30  ;;  %v221_v34 = vld [vmem:[%s758_s5 + $0x18] sm:$0xff]  ;;  %v222_v36 = vld [vmem:[%s758_s5 + $0x20] sm:$0xff]  ;;  %v223_v37 = vld [vmem:[%s758_s5 + $0x28] sm:$0xff] }
  0x1b   :  { %455 = vmatpush3.bf16.msra.mxu1 %v454_v11  ;;  %v478_v35 = vpack.c.bf16 %v221_v34, %v220_v32  ;;  %v481_v38 = vpack.c.bf16 %v223_v37, %v222_v36  ;;  %v224_v39 = vld [vmem:[%s758_s5 + $0x30] sm:$0xff]  ;;  %v225_v40 = vld [vmem:[%s758_s5 + $0x38] sm:$0xff]  ;;  %v226_v42 = vld [vmem:[%s758_s5 + $0x40] sm:$0xff] }
  0x1c   :  { %456 = vmatprep.subr.bf16.mxu1 %v554_v0  ;;  %476 = vmatpush3.bf16.msra.mxu0 %v475_v33  ;;  %v484_v41 = vpack.c.bf16 %v225_v40, %v224_v39  ;;  %v227_v43 = vld [vmem:[%s758_s5 + $0x48] sm:$0xff]  ;;  %v228_v45 = vld [vmem:[%s758_s5 + $0x50] sm:$0xff]  ;;  %v229_v46 = vld [vmem:[%s758_s5 + $0x58] sm:$0xff] }
  0x1d   :  { %477 = vmatprep.subr.bf16.mxu0 %v554_v0  ;;  %v487_v44 = vpack.c.bf16 %v227_v43, %v226_v42  ;;  %v490_v47 = vpack.c.bf16 %v229_v46, %v228_v45  ;;  %v230_v48 = vld [vmem:[%s758_s5 + $0x60] sm:$0xff]  ;;  %v231_v49 = vld [vmem:[%s758_s5 + $0x68] sm:$0xff]  ;;  %v232_v56 = vld [vmem:[%s758_s5 + $0x70] sm:$0xff] }
  0x1e   :  { %v493_v50 = vpack.c.bf16 %v231_v49, %v230_v48  ;;  %v329_v51 = vld [vmem:[%s755_s2] ss:$0 sm:$0xff]  ;;  %v233_v57 = vld [vmem:[%s758_s5 + $0x78] sm:$0xff]  ;;  %s557_s5 = smov [#allocation5]  }
  0x1f   :  { %458 = vmatpush3.bf16.msra.mxu1 %v457_v14  ;;  %v496_v58 = vpack.c.bf16 %v233_v57, %v232_v56  ;;  %v331_v59 = vld [vmem:[%s757_s4] ss:$0 sm:$0xff]  ;;  %s320_s9 = sshll.u32 %s557_s5, 4  ;;  %s321_s9 = int_to_ptr.vmem [resolvable:$true] %s320_s9 }
  0x20   :  { %459 = vmatprep.subr.bf16.mxu1 %v554_v0  ;;  %479 = vmatpush3.bf16.msra.mxu0 %v478_v35  ;;  %s527_s4 = scalar_lea.vmem %s321_s9, 128  ;;  %p532_p9 = scmp.lt.s32.totalorder %s321_s9, %s321_s9 }
  0x21   :  { %480 = vmatprep.subr.bf16.mxu0 %v554_v0  ;;  %p528_p8 = scmp.ne.s32.totalorder %s321_s9, %s527_s4  ;;  %p533_p10 = scmp.lt.s32.totalorder %s527_s4, %s527_s4 }
  0x23   :  { %461 = vmatpush3.bf16.msra.mxu1 %v460_v17  ;;  %p534_p11 = por %p533_p10, %p532_p9 }
  0x24   :  { %462 = vmatprep.subr.bf16.mxu1 %v554_v0  ;;  %482 = vmatpush3.bf16.msra.mxu0 %v481_v38 }
  0x25   :  { %483 = vmatprep.subr.bf16.mxu0 %v554_v0  ;;  %p535_p12 = pnand %p534_p11, %p528_p8 }
  0x27   :  { %464 = vmatpush3.bf16.msra.mxu1 %v463_v20 }
  0x28   :  { %465 = vmatprep.subr.bf16.mxu1 %v554_v0  ;;  %485 = vmatpush3.bf16.msra.mxu0 %v484_v41 }
  0x29   :  { %486 = vmatprep.subr.bf16.mxu0 %v554_v0 }
  0x2b   :  { %467 = vmatpush3.bf16.msra.mxu1 %v466_v23 }
  0x2c   :  { %468 = vmatprep.subr.bf16.mxu1 %v554_v0  ;;  %488 = vmatpush3.bf16.msra.mxu0 %v487_v44 }
  0x2d   :  { %489 = vmatprep.subr.bf16.mxu0 %v554_v0 }
  0x2f   :  { %470 = vmatpush3.bf16.msra.mxu1 %v469_v26 }
  0x30   :  { %471 = vmatprep.subr.bf16.mxu1 %v554_v0  ;;  %491 = vmatpush3.bf16.msra.mxu0 %v490_v47 }
  0x31   :  { %492 = vmatprep.subr.bf16.mxu0 %v554_v0 }
  0x33   :  { %473 = vmatpush3.bf16.msra.mxu1 %v472_v29 }
  0x34   :  { %494 = vmatpush3.bf16.msra.mxu0 %v493_v50 }
  0x35   :  { %495 = vmatprep.subr.bf16.mxu0 %v554_v0  ;;  %v332_v0 = vld [vmem:[%s759_s6] ss:$0 sm:$0xff] }
  0x38   :  { %497 = vmatpush3.bf16.msra.mxu0 %v496_v58 }
  0xec   :  { %v119_v52 = vpop.f32.mrb[0].mxu0 }
  0xed   :  { %v120_v53 = vadd.f32 %v329_v51, %v119_v52  ;;  %v376_v54 = vpop.f32.mrb[1].mxu0 }
  0xef   :  { %v123_v55 = vmax.f32 %v120_v53, 0.0 }
  0xf1   :  { %410 = vmatmul.mubr.f32.vlgmr.msra.gmra.mrb[0].mxu1 %v123_v55 }
 0x1c4   :  { %v213_v60 = vpop.f32.mrb[0].mxu1 }
 0x1c5   :  { %v214_v61 = vadd.f32 %v331_v59, %v213_v60  ;;  %v411_v62 = vpop.f32.mrb[1].mxu1 }
 0x1c7   :  { %v217_v63 = vmax.f32 %v214_v61, 0.0 }
 0x1c9   :  { %445 = vmatmul.mubr.f32.vlgmr.msra.gmra.mrb[2].mxu0 %v217_v63 }
 0x29c   :  { %v307_v1 = vpop.f32.mrb[2].mxu0 }
 0x29d   :  { %v308_v2 = vadd.f32 %v332_v0, %v307_v1  ;;  %v446_v3 = vpop.f32.mrb[3].mxu0 }
 0x29f   :  { %503 = vtanh.f32 %v308_v2 }
 0x2a9   :  { %v504_v4 = vpop.eup %503 }
 0x2aa   :  { %313 = vst.msk [vmem:[#allocation5] sm:$0xff] %vm312_vm2, %v504_v4 }
 0x2ab   :  { %538 = shalt.err (!%p535_p12)
}
 0x2ac   :  { %s539_s6 = scalar_lea.hbm %s760_s7, 128 }
 0x2ad   :  { %p540_p13 = scmp.ne.s32.totalorder %s760_s7, %s539_s6  ;;  %p543_p0 = scmp.lt.u32.totalorder %s539_s6, %s760_s7 }
 0x2af   :  { %p545_p1 = pnand %p543_p0, %p540_p13 }
 0x2b1   :  { %548 = shalt.err (!%p545_p1)
}
 0x2b2   :  { %323 = dma.vmem_to_hbm [thread:$0]  %s321_s9, 128, %s760_s7, [#allocation4]  }
 0x2b3   :  { %551 = dma.done.wait [#allocation4], 128  }
 0x2b4   :  { %552 = vsyncadd [#allocation4], 4294967168 }
 0x2b5   :  { %327 = vsyncpa [#allocation3], 1 }
 0x2b6   :  { %328 = vsyncpa [#allocation4], 1 }

</bundles_post_ra>
